<compile_context>
chip_gen: v7x
topology: tpu7x:2x2x1
jax: 0.10.0
libtpu: 0.0.40
codegen_flags: <defaults>
</compile_context>

<pallas_src>
import math

import jax
import jax.numpy as jnp
from jax.experimental import pallas as pl
from jax.experimental.pallas import tpu as pltpu


def _round_up(n, m):
    return ((n + m - 1) // m) * m


# ---------------------------------------------------------------------------
# Kernels
# ---------------------------------------------------------------------------

def _fused_kernel(x_ref, w_ref, bias_ref, out_ref):
    # x_ref    : (Tb, 2H)       batch tile of x (full width)
    # w_ref    : (2H, Wout)     block-diagonal [Ww ⊕ Wb], zero-padded to Wout
    # bias_ref : (1, Wout)      f32, [bias | bias | 0-pad]
    # out_ref  : (Tb, Wout)     f32 fused output slab
    x = x_ref[...]
    w = w_ref[...]
    if x.dtype != w.dtype:          # per-tile cast; x stays f32 on the wire
        x = x.astype(w.dtype)
    out_ref[...] = (
        jnp.dot(x, w, preferred_element_type=jnp.float32) + bias_ref[...]
    ).astype(out_ref.dtype)


def _split_kernel(xw_ref, xb_ref, ww_ref, wb_ref, bias_ref, ow_ref, ob_ref):
    # xw_ref / xb_ref : (Tb, H)  lane-aligned halves, split at DMA time
    # ww_ref / wb_ref : (H, O)   resident weights (already transposed)
    # bias_ref        : (1, O)
    xw = xw_ref[...]
    xb = xb_ref[...]
    ww = ww_ref[...]
    wb = wb_ref[...]
    if xw.dtype != ww.dtype:        # per-tile cast; x stays f32 on the wire
        xw = xw.astype(ww.dtype)
        xb = xb.astype(wb.dtype)
    bias = bias_ref[...]
    ow_ref[...] = (jnp.dot(xw, ww, preferred_element_type=jnp.float32) + bias
                   ).astype(ow_ref.dtype)
    ob_ref[...] = (jnp.dot(xb, wb, preferred_element_type=jnp.float32) + bias
                   ).astype(ob_ref.dtype)


# ---------------------------------------------------------------------------
# Wrapper
# ---------------------------------------------------------------------------

def mirrored_layer_forward(x, white_weights, bias, *, block_b=512,
                           compute_dtype=None):
    """Pallas implementation of MirroredLayer.forward.

    Args:
      x: (batch, input_size), input_size even.
      white_weights: (output_size, input_size // 2).
      bias: (output_size,).
      block_b: requested batch tile size (rows per grid step).
      compute_dtype: optional MXU input dtype (e.g. jnp.bfloat16) — used for
        the weights and a per-tile in-kernel cast of x; accumulation and
        outputs stay float32. Works on v5e / v6e / v7x.

    Returns:
      (out_white, out_black), each (batch, output_size) float32.
    """
    batch, input_size = x.shape
    output_size, half = white_weights.shape
    assert input_size % 2 == 0 and input_size // 2 == half

    cdtype = jnp.dtype(compute_dtype) if compute_dtype is not None else jnp.dtype(x.dtype)
    xbytes = jnp.dtype(x.dtype).itemsize
    sub = {1: 32, 2: 16}.get(xbytes, 8)     # sublane granule of x on the wire

    # Path choice: fused block-diagonal matmul for small layers (fills the MXU
    # tile, lane-dense output); split path for large 128-aligned layers.
    fuse = (2 * half <= 256 and 2 * output_size <= 256) or (half % 128 != 0)

    # ---- parameter prep (tiny one-time glue; x itself is NOT touched) ------
    ww_t = white_weights.T.astype(cdtype)                           # (H, O)
    wb_t = jnp.flip(white_weights, axis=(0, 1)).T.astype(cdtype)    # (H, O)
    bias_f32 = bias.astype(jnp.float32)

    if fuse:
        out_width = _round_up(2 * output_size, 128)     # lane-dense output
        w_fused = jnp.zeros((input_size, out_width), cdtype)
        w_fused = w_fused.at[:half, :output_size].set(ww_t)
        w_fused = w_fused.at[half:, output_size:2 * output_size].set(wb_t)
        bias2d = jnp.zeros((1, out_width), jnp.float32)
        bias2d = bias2d.at[0, :output_size].set(bias_f32)
        bias2d = bias2d.at[0, output_size:2 * output_size].set(bias_f32)
        w_bytes = input_size * out_width * cdtype.itemsize
    else:
        out_width = 2 * output_size
        bias2d = bias_f32.reshape(1, output_size)
        w_bytes = 2 * half * output_size * cdtype.itemsize
    bias_bytes = int(bias2d.size) * 4

    # ---- generation-aware batch-tile sizing --------------------------------
    try:
        vmem_cap = int(pltpu.get_tpu_info().vmem_capacity_bytes)
    except Exception:
        vmem_cap = 128 * 1024 * 1024
    budget = (20 << 20) if vmem_cap <= (64 << 20) else (26 << 20)

    # Double-buffered x tile + output tile; weights/bias counted resident
    # (worst case x2 buffers, in case Buffered(1) is unavailable).
    row_bytes = 2 * input_size * xbytes + 2 * out_width * 4
    resident = 2 * (w_bytes + bias_bytes)
    avail = max(budget - resident, sub * row_bytes)
    max_rows = max(sub, (avail // row_bytes) // sub * sub)
    block_b = max(sub, min(_round_up(block_b, sub), max_rows,
                           _round_up(batch, sub)))
    n_tiles = pl.cdiv(batch, block_b)
    if n_tiles < 2 and batch > sub:          # keep both v7x TensorCores busy
        block_b = max(sub, _round_up(pl.cdiv(batch, 2), sub))
        n_tiles = pl.cdiv(batch, block_b)

    est_vmem = resident + block_b * row_bytes + (1 << 20)
    vmem_limit = int(min(max(est_vmem, 16 << 20), 40 << 20, vmem_cap // 2))

    rows = n_tiles * block_b
    flops = 2 * rows * input_size * (out_width if fuse else output_size)
    bytes_accessed = (rows * input_size * xbytes + w_bytes + bias_bytes
                      + rows * out_width * 4)
    cost = pl.CostEstimate(flops=int(flops), transcendentals=0,
                           bytes_accessed=int(bytes_accessed))
    cparams = pltpu.CompilerParams(dimension_semantics=("parallel",),
                                   vmem_limit_bytes=vmem_limit)

    def _call(single_buffer_resident):
        res_kw = ({"pipeline_mode": pl.Buffered(1)}
                  if single_buffer_resident else {})
        if fuse:
            return pl.pallas_call(
                _fused_kernel,
                out_shape=jax.ShapeDtypeStruct((batch, out_width), jnp.float32),
                grid=(n_tiles,),
                in_specs=[
                    pl.BlockSpec((block_b, input_size), lambda i: (i, 0)),
                    pl.BlockSpec((input_size, out_width), lambda i: (0, 0), **res_kw),
                    pl.BlockSpec((1, out_width), lambda i: (0, 0), **res_kw),
                ],
                out_specs=pl.BlockSpec((block_b, out_width), lambda i: (i, 0)),
                compiler_params=cparams,
                cost_estimate=cost,
            )(x, w_fused, bias2d)
        return pl.pallas_call(
            _split_kernel,
            out_shape=(jax.ShapeDtypeStruct((batch, output_size), jnp.float32),
                       jax.ShapeDtypeStruct((batch, output_size), jnp.float32)),
            grid=(n_tiles,),
            in_specs=[
                # Same array passed twice: each arg only DMAs its own column
                # block, so x is still read from HBM exactly once in total.
                pl.BlockSpec((block_b, half), lambda i: (i, 0)),   # white half
                pl.BlockSpec((block_b, half), lambda i: (i, 1)),   # black half
                pl.BlockSpec((half, output_size), lambda i: (0, 0), **res_kw),
                pl.BlockSpec((half, output_size), lambda i: (0, 0), **res_kw),
                pl.BlockSpec((1, output_size), lambda i: (0, 0), **res_kw),
            ],
            out_specs=(pl.BlockSpec((block_b, output_size), lambda i: (i, 0)),
                       pl.BlockSpec((block_b, output_size), lambda i: (i, 0))),
            compiler_params=cparams,
            cost_estimate=cost,
        )(x, x, ww_t, wb_t, bias2d)

    try:
        out = _call(True)
    except Exception:
        # pipeline_mode=pl.Buffered(1) not supported on this JAX/Mosaic
        # version — fall back to default double-buffered resident operands.
        out = _call(False)

    if fuse:
        return out[:, :output_size], out[:, output_size:2 * output_size]
    return out


# ---------------------------------------------------------------------------
# Reference & demo
# ---------------------------------------------------------------------------

def _xavier_uniform(key, shape):
    # Matches torch.nn.init.xavier_uniform_ for a 2D (fan_out, fan_in) tensor.
    fan_out, fan_in = shape
    limit = math.sqrt(6.0 / (fan_in + fan_out))
    return jax.random.uniform(key, shape, dtype=jnp.float32,
                              minval=-limit, maxval=limit)


def _reference_forward(x, white_weights, bias):
    # Pure-JAX reference mirroring the PyTorch semantics (full-f32 matmuls).
    half = x.shape[1] // 2
    x_white, x_black = x[:, :half], x[:, half:]
    black_weights = jnp.flip(white_weights, axis=(0, 1))
    hp = jax.lax.Precision.HIGHEST
    out_white = jnp.dot(x_white, white_weights.T, precision=hp) + bias
    out_black = jnp.dot(x_black, black_weights.T, precision=hp) + bias
    return out_white, out_black


if __name__ == "__main__":
    batch, input_size, output_size = 8, 64, 32

    key = jax.random.PRNGKey(0)
    k_x, k_w, k_b, k_x2, k_x3, k_w3, k_b3 = jax.random.split(key, 7)

    x = jax.random.normal(k_x, (batch, input_size), dtype=jnp.float32)
    white_weights = _xavier_uniform(k_w, (output_size, input_size // 2))
    bias = 0.1 * jax.random.normal(k_b, (output_size,), dtype=jnp.float32)

    # Tolerances allow for MXU default-precision differences vs the f32
    # reference while still catching any structural/semantic error (O(1)).
    F32_TOL = dict(atol=2e-2, rtol=2e-2)
    BF16_TOL = dict(atol=5e-2, rtol=5e-2)

    # 1) Fused block-diagonal path, f32.
    ow, ob = mirrored_layer_forward(x, white_weights, bias)
    jax.block_until_ready((ow, ob))
    rw, rb = _reference_forward(x, white_weights, bias)
    assert ow.shape == (batch, output_size) and ob.shape == (batch, output_size)
    assert jnp.allclose(ow, rw, **F32_TOL)
    assert jnp.allclose(ob, rb, **F32_TOL)

    # 2) Ragged batch (13 rows, block_b=8) -> multi-tile grid with masked tail.
    x2 = jax.random.normal(k_x2, (13, input_size), dtype=jnp.float32)
    o2w, o2b = mirrored_layer_forward(x2, white_weights, bias, block_b=8)
    jax.block_until_ready((o2w, o2b))
    r2w, r2b = _reference_forward(x2, white_weights, bias)
    assert o2w.shape == (13, output_size) and o2b.shape == (13, output_size)
    assert jnp.allclose(o2w, r2w, **F32_TOL)
    assert jnp.allclose(o2b, r2b, **F32_TOL)

    # 3) bf16 MXU inputs (per-tile cast in the kernel), f32 accumulation.
    b16w, b16b = mirrored_layer_forward(x, white_weights, bias,
                                        compute_dtype=jnp.bfloat16)
    jax.block_until_ready((b16w, b16b))
    assert jnp.allclose(b16w, rw, **BF16_TOL)
    assert jnp.allclose(b16b, rb, **BF16_TOL)

    # 4) Larger 128-aligned layer -> split (two-matmul, DMA-split halves) path.
    in3, out3, b3 = 512, 128, 16
    x3 = jax.random.normal(k_x3, (b3, in3), dtype=jnp.float32)
    w3 = _xavier_uniform(k_w3, (out3, in3 // 2))
    bias3 = 0.1 * jax.random.normal(k_b3, (out3,), dtype=jnp.float32)
    o3w, o3b = mirrored_layer_forward(x3, w3, bias3)
    jax.block_until_ready((o3w, o3b))
    r3w, r3b = _reference_forward(x3, w3, bias3)
    assert o3w.shape == (b3, out3) and o3b.shape == (b3, out3)
    assert jnp.allclose(o3w, r3w, **F32_TOL)
    assert jnp.allclose(o3b, r3b, **F32_TOL)

    print("KERNEL_OK")
</pallas_src>

<mosaic_0001>
module attributes {stable_mosaic.version = 11 : i64} {
  func.func @_fused_kernel(%arg0: i32, %arg1: memref<8x64xf32, #tpu.memory_space<vmem>>, %arg2: memref<64x128xf32, #tpu.memory_space<vmem>>, %arg3: memref<1x128xf32, #tpu.memory_space<vmem>>, %arg4: memref<8x128xf32, #tpu.memory_space<vmem>>) attributes {dimension_semantics = [#tpu.dimension_semantics<parallel>], iteration_bounds = array<i64: 1>, scalar_prefetch = 0 : i64, scratch_operands = 0 : i64, tpu.core_type = #tpu.core_type<tc>, window_params = [{transform_indices = @transform_0, window_bounds = array<i64: 8, 64>}, {pipeline_mode = #tpu.pipeline_mode<synchronous>, transform_indices = @transform_1, window_bounds = array<i64: 64, 128>}, {pipeline_mode = #tpu.pipeline_mode<synchronous>, transform_indices = @transform_2, window_bounds = array<i64: 1, 128>}, {transform_indices = @transform_3, window_bounds = array<i64: 8, 128>}]} {
    %c0 = arith.constant 0 : index
    %c0_0 = arith.constant 0 : index
    %0 = vector.load %arg1[%c0, %c0_0] : memref<8x64xf32, #tpu.memory_space<vmem>>, vector<8x64xf32>
    %c0_1 = arith.constant 0 : index
    %c0_2 = arith.constant 0 : index
    %1 = vector.load %arg2[%c0_1, %c0_2] : memref<64x128xf32, #tpu.memory_space<vmem>>, vector<64x128xf32>
    %cst = arith.constant dense<0.000000e+00> : vector<8x128xf32>
    %2 = tpu.matmul %0, %1, %cst {dimension_numbers = #tpu.dot_dimension_numbers<[1], [0], [0], [1], [0, 0, 1, 1], [], []>} : vector<8x64xf32>, vector<64x128xf32>, vector<8x128xf32> -> vector<8x128xf32>
    %c0_3 = arith.constant 0 : index
    %c0_4 = arith.constant 0 : index
    %3 = vector.load %arg3[%c0_3, %c0_4] : memref<1x128xf32, #tpu.memory_space<vmem>>, vector<1x128xf32>
    %4 = vector.broadcast %3 : vector<1x128xf32> to vector<8x128xf32>
    %5 = arith.addf %2, %4 : vector<8x128xf32>
    %c0_5 = arith.constant 0 : index
    %c0_6 = arith.constant 0 : index
    %6 = vector.load %arg4[%c0_5, %c0_6] : memref<8x128xf32, #tpu.memory_space<vmem>>, vector<8x128xf32>
    tpu.vector_store %arg4[%c0_5, %c0_6], %5 {strides = array<i32>} : memref<8x128xf32, #tpu.memory_space<vmem>>, vector<8x128xf32>,
    return
  }
  func.func @transform_0(%arg0: i32) -> (i32, i32) {
    %c0_i32 = arith.constant 0 : i32
    %c0_i32_0 = arith.constant 0 : i32
    return %arg0, %c0_i32 : i32, i32
  }
  func.func @transform_1(%arg0: i32) -> (i32, i32) {
    %c0_i32 = arith.constant 0 : i32
    %c0_i32_0 = arith.constant 0 : i32
    %c0_i32_1 = arith.constant 0 : i32
    return %c0_i32, %c0_i32_0 : i32, i32
  }
  func.func @transform_2(%arg0: i32) -> (i32, i32) {
    %c0_i32 = arith.constant 0 : i32
    %c0_i32_0 = arith.constant 0 : i32
    %c0_i32_1 = arith.constant 0 : i32
    return %c0_i32, %c0_i32_0 : i32, i32
  }
  func.func @transform_3(%arg0: i32) -> (i32, i32) {
    %c0_i32 = arith.constant 0 : i32
    %c0_i32_0 = arith.constant 0 : i32
    return %arg0, %c0_i32 : i32, i32
  }
}

module attributes {stable_mosaic.version = 11 : i64} {
  func.func @_fused_kernel(%arg0: i32, %arg1: memref<8x64xf32, #tpu.memory_space<vmem>>, %arg2: memref<64x128xf32, #tpu.memory_space<vmem>>, %arg3: memref<1x128xf32, #tpu.memory_space<vmem>>, %arg4: memref<8x128xf32, #tpu.memory_space<vmem>>) attributes {dimension_semantics = [#tpu.dimension_semantics<parallel>], iteration_bounds = array<i64: 1>, scalar_prefetch = 0 : i64, scratch_operands = 0 : i64, tpu.core_type = #tpu.core_type<tc>, window_params = [{transform_indices = @transform_0, window_bounds = array<i64: 8, 64>}, {pipeline_mode = #tpu.pipeline_mode<synchronous>, transform_indices = @transform_1, window_bounds = array<i64: 64, 128>}, {pipeline_mode = #tpu.pipeline_mode<synchronous>, transform_indices = @transform_2, window_bounds = array<i64: 1, 128>}, {transform_indices = @transform_3, window_bounds = array<i64: 8, 128>}]} {
    %c0 = arith.constant 0 : index
    %c0_0 = arith.constant 0 : index
    %0 = vector.load %arg1[%c0, %c0_0] : memref<8x64xf32, #tpu.memory_space<vmem>>, vector<8x64xf32>
    %c0_1 = arith.constant 0 : index
    %c0_2 = arith.constant 0 : index
    %1 = vector.load %arg2[%c0_1, %c0_2] : memref<64x128xf32, #tpu.memory_space<vmem>>, vector<64x128xf32>
    %cst = arith.constant dense<0.000000e+00> : vector<8x128xf32>
    %2 = tpu.matmul %0, %1, %cst {dimension_numbers = #tpu.dot_dimension_numbers<[1], [0], [0], [1], [0, 0, 1, 1], [], []>} : vector<8x64xf32>, vector<64x128xf32>, vector<8x128xf32> -> vector<8x128xf32>
    %c0_3 = arith.constant 0 : index
    %c0_4 = arith.constant 0 : index
    %3 = vector.load %arg3[%c0_3, %c0_4] : memref<1x128xf32, #tpu.memory_space<vmem>>, vector<1x128xf32>
    %4 = vector.broadcast %3 : vector<1x128xf32> to vector<8x128xf32>
    %5 = arith.addf %2, %4 : vector<8x128xf32>
    %c0_5 = arith.constant 0 : index
    %c0_6 = arith.constant 0 : index
    %6 = vector.load %arg4[%c0_5, %c0_6] : memref<8x128xf32, #tpu.memory_space<vmem>>, vector<8x128xf32>
    tpu.vector_store %arg4[%c0_5, %c0_6], %5 {strides = array<i32>} : memref<8x128xf32, #tpu.memory_space<vmem>>, vector<8x128xf32>,
    return
  }
  func.func @transform_0(%arg0: i32) -> (i32, i32) {
    %c0_i32 = arith.constant 0 : i32
    %c0_i32_0 = arith.constant 0 : i32
    return %arg0, %c0_i32 : i32, i32
  }
  func.func @transform_1(%arg0: i32) -> (i32, i32) {
    %c0_i32 = arith.constant 0 : i32
    %c0_i32_0 = arith.constant 0 : i32
    %c0_i32_1 = arith.constant 0 : i32
    return %c0_i32, %c0_i32_0 : i32, i32
  }
  func.func @transform_2(%arg0: i32) -> (i32, i32) {
    %c0_i32 = arith.constant 0 : i32
    %c0_i32_0 = arith.constant 0 : i32
    %c0_i32_1 = arith.constant 0 : i32
    return %c0_i32, %c0_i32_0 : i32, i32
  }
  func.func @transform_3(%arg0: i32) -> (i32, i32) {
    %c0_i32 = arith.constant 0 : i32
    %c0_i32_0 = arith.constant 0 : i32
    return %arg0, %c0_i32 : i32, i32
  }
}

</mosaic_0001>

<bundles_post_ra>
// kernel: tpu_custom_call.1
= control target key start
LH: loop header
LB: loop body
LE: loop exit
PB: predicated region body
PF: predicated region fallthrough
CT: control target
= control target key end

     0   :  { %8 = vsyncpa [#allocation3], 0  ;;  %s344_s0 = inlined_call_operand.hbm [shape: f32[8,64], index: 0, kind: input, shape index: {}]   ;;  %s345_s1 = inlined_call_operand.hbm [shape: f32[64,128], index: 1, kind: input, shape index: {}]   ;;  %s346_s2 = inlined_call_operand.vmem [shape: f32[1,128], index: 2, kind: input, shape index: {}]   ;;  %s347_s3 = inlined_call_operand.hbm [shape: f32[8,128], index: 3, kind: output, shape index: {}]  }
   0x1   :  { %9 = vsyncpa [#allocation6], 0 }
   0x2   :  { %10 = vsyncpa [#allocation4], 0  ;;  %s270_s12 = smov [#allocation2]   ;;  %s271_s14 = smov [#allocation5]  }
   0x3   :  { %s17_s13 = sshll.u32 %s270_s12, 4  ;;  %s26_s15 = sshll.u32 %s271_s14, 4  ;;  %s18_s13 = int_to_ptr.vmem [resolvable:$true] %s17_s13  ;;  %s298_s15 = int_to_ptr.vmem [resolvable:$true] %s26_s15 }
   0x4   :  { %s198_s18 = scalar_lea.hbm %s344_s0, 128 }
   0x5   :  { %p199_p0 = scmp.ne.s32.totalorder %s344_s0, %s198_s18  ;;  %p202_p1 = scmp.lt.u32.totalorder %s198_s18, %s344_s0 }
   0x7   :  { %p204_p2 = pnand %p202_p1, %p199_p0 }
   0x9   :  { %207 = shalt.err (!%p204_p2)
}
   0xa   :  { %s208_s23 = scalar_lea.vmem %s18_s13, 128  ;;  %p213_p4 = scmp.lt.s32.totalorder %s18_s13, %s18_s13 }
   0xb   :  { %p209_p3 = scmp.ne.s32.totalorder %s18_s13, %s208_s23  ;;  %p214_p5 = scmp.lt.s32.totalorder %s208_s23, %s208_s23 }
   0xd   :  { %p215_p6 = por %p214_p5, %p213_p4 }
   0xf   :  { %p216_p7 = pnand %p215_p6, %p209_p3 }
  0x11   :  { %219 = shalt.err (!%p216_p7)
}
  0x12   :  { %20 = dma.hbm_to_vmem [thread:$0]  %s344_s0, 128, %s18_s13, [#allocation3]  }
  0x13   :  { %s220_s28 = scalar_lea.hbm %s345_s1, 1024 }
  0x14   :  { %p221_p8 = scmp.ne.s32.totalorder %s345_s1, %s220_s28  ;;  %p224_p9 = scmp.lt.u32.totalorder %s220_s28, %s345_s1 }
  0x16   :  { %p226_p10 = pnand %p224_p9, %p221_p8 }
  0x18   :  { %229 = shalt.err (!%p226_p10)
}
  0x19   :  { %s230_s6 = scalar_lea.vmem %s298_s15, 1024  ;;  %p235_p12 = scmp.lt.s32.totalorder %s298_s15, %s298_s15 }
  0x1a   :  { %p231_p11 = scmp.ne.s32.totalorder %s298_s15, %s230_s6  ;;  %p236_p13 = scmp.lt.s32.totalorder %s230_s6, %s230_s6 }
  0x1c   :  { %p237_p0 = por %p236_p13, %p235_p12 }
  0x1e   :  { %p238_p1 = pnand %p237_p0, %p231_p11 }
  0x20   :  { %241 = shalt.err (!%p238_p1)
}
  0x21   :  { %s272_s0 = smov 128   ;;  %s273_s7 = smov 8  }
  0x22   :  { %32 = dma.hbm_to_vmem [thread:$0]  %s345_s1, 1024, %s298_s15, [#allocation6], %s272_s0, %s272_s0, %s273_s7  }
  0x23   :  { %264 = dma.done.wait [#allocation3], 128  }
  0x24   :  { %265 = vsyncadd [#allocation3], 4294967168 }
  0x25   :  { %266 = dma.done.wait [#allocation6], 1024  }
  0x26   :  { %267 = vsyncadd [#allocation6], 4294966272  ;;  %v274_v0 = vmov 0.0|0.0   ;;  %vm275_vm0 = vmmov 0   ;;  %v276_v1 = vmov 0.0   ;;  %v42_v2 = vld [vmem:[#allocation5] sm:$0xff] }
  0x27   :  { %178 = vmatprep.subr.bf16.mxu0 %v274_v0  ;;  %175 = vmatprep.mubr.msk.f32.mxu0 %vm275_vm0, %v276_v1  ;;  %v43_v3 = vld [vmem:[#allocation5 + $0x8] sm:$0xff]  ;;  %v44_v4 = vld [vmem:[#allocation5 + $0x10] sm:$0xff]  ;;  %v45_v6 = vld [vmem:[#allocation5 + $0x18] sm:$0xff]  ;;  %vm57_vm1 = vcmask 523264   ;;  %s277_s11 = smov [#allocation7]  }
  0x28   :  { %v179_v5 = vpack.c.bf16 %v43_v3, %v42_v2  ;;  %v182_v7 = vpack.c.bf16 %v45_v6, %v44_v4  ;;  %v46_v8 = vld [vmem:[#allocation5 + $0x20] sm:$0xff]  ;;  %v47_v9 = vld [vmem:[#allocation5 + $0x28] sm:$0xff]  ;;  %v48_v11 = vld [vmem:[#allocation5 + $0x30] sm:$0xff]  ;;  %s138_s12 = sshll.u32 %s277_s11, 4  ;;  %s139_s12 = int_to_ptr.vmem [resolvable:$true] %s138_s12 }
  0x29   :  { %v185_v10 = vpack.c.bf16 %v47_v9, %v46_v8  ;;  %v49_v12 = vld [vmem:[#allocation5 + $0x38] sm:$0xff]  ;;  %s242_s13 = scalar_lea.vmem %s139_s12, 128  ;;  %p247_p3 = scmp.lt.s32.totalorder %s139_s12, %s139_s12 }
  0x2a   :  { %180 = vmatpush3.bf16.msra.mxu0 %v179_v5  ;;  %v188_v13 = vpack.c.bf16 %v49_v12, %v48_v11  ;;  %v41_v14 = vld [vmem:[#allocation2] sm:$0xff]  ;;  %p243_p2 = scmp.ne.s32.totalorder %s139_s12, %s242_s13  ;;  %p248_p4 = scmp.lt.s32.totalorder %s242_s13, %s242_s13 }
  0x2b   :  { %181 = vmatprep.subr.bf16.mxu0 %v274_v0  ;;  %v148_v15 = vld [vmem:[%s346_s2] ss:$0 sm:$0xff] }
  0x2c   :  { %p249_p5 = por %p248_p4, %p247_p3 }
  0x2e   :  { %183 = vmatpush3.bf16.msra.mxu0 %v182_v7  ;;  %p250_p6 = pnand %p249_p5, %p243_p2 }
  0x2f   :  { %184 = vmatprep.subr.bf16.mxu0 %v274_v0 }
  0x32   :  { %186 = vmatpush3.bf16.msra.mxu0 %v185_v10 }
  0x33   :  { %187 = vmatprep.subr.bf16.mxu0 %v274_v0 }
  0x36   :  { %189 = vmatpush3.bf16.msra.mxu0 %v188_v13 }
  0x39   :  { %176 = vmatmul.mubr.msk.f32.vlgmr.msra.gmra.mrb[0].mxu0 %vm57_vm1, %v41_v14 }
 0x10c   :  { %v127_v16 = vpop.f32.mrb[0].mxu0 }
 0x10d   :  { %v128_v17 = vadd.f32 %v148_v15, %v127_v16  ;;  %v177_v18 = vpop.f32.mrb[1].mxu0 }
 0x10f   :  { %131 = vst [vmem:[#allocation7] sm:$0xff] %v128_v17 }
 0x110   :  { %253 = shalt.err (!%p250_p6)
}
 0x111   :  { %s254_s16 = scalar_lea.hbm %s347_s3, 128 }
 0x112   :  { %p255_p7 = scmp.ne.s32.totalorder %s347_s3, %s254_s16  ;;  %p258_p8 = scmp.lt.u32.totalorder %s254_s16, %s347_s3 }
 0x114   :  { %p260_p9 = pnand %p258_p8, %p255_p7 }
 0x116   :  { %263 = shalt.err (!%p260_p9)
}
 0x117   :  { %141 = dma.vmem_to_hbm [thread:$0]  %s139_s12, 128, %s347_s3, [#allocation4]  }
 0x118   :  { %268 = dma.done.wait [#allocation4], 128  }
 0x119   :  { %269 = vsyncadd [#allocation4], 4294967168 }
 0x11a   :  { %145 = vsyncpa [#allocation3], 1 }
 0x11b   :  { %146 = vsyncpa [#allocation6], 1 }
 0x11c   :  { %147 = vsyncpa [#allocation4], 1 }

// kernel: tpu_custom_call.1
= control target key start
LH: loop header
LB: loop body
LE: loop exit
PB: predicated region body
PF: predicated region fallthrough
CT: control target
= control target key end

     0   :  { %8 = vsyncpa [#allocation3], 0  ;;  %s344_s0 = inlined_call_operand.hbm [shape: f32[8,64], index: 0, kind: input, shape index: {}]   ;;  %s345_s1 = inlined_call_operand.hbm [shape: f32[64,128], index: 1, kind: input, shape index: {}]   ;;  %s346_s2 = inlined_call_operand.vmem [shape: f32[1,128], index: 2, kind: input, shape index: {}]   ;;  %s347_s3 = inlined_call_operand.hbm [shape: f32[8,128], index: 3, kind: output, shape index: {}]  }
   0x1   :  { %9 = vsyncpa [#allocation6], 0 }
   0x2   :  { %10 = vsyncpa [#allocation4], 0  ;;  %s270_s12 = smov [#allocation2]   ;;  %s271_s14 = smov [#allocation5]  }
   0x3   :  { %s17_s13 = sshll.u32 %s270_s12, 4  ;;  %s26_s15 = sshll.u32 %s271_s14, 4  ;;  %s18_s13 = int_to_ptr.vmem [resolvable:$true] %s17_s13  ;;  %s298_s15 = int_to_ptr.vmem [resolvable:$true] %s26_s15 }
   0x4   :  { %s198_s18 = scalar_lea.hbm %s344_s0, 128 }
   0x5   :  { %p199_p0 = scmp.ne.s32.totalorder %s344_s0, %s198_s18  ;;  %p202_p1 = scmp.lt.u32.totalorder %s198_s18, %s344_s0 }
   0x7   :  { %p204_p2 = pnand %p202_p1, %p199_p0 }
   0x9   :  { %207 = shalt.err (!%p204_p2)
}
   0xa   :  { %s208_s23 = scalar_lea.vmem %s18_s13, 128  ;;  %p213_p4 = scmp.lt.s32.totalorder %s18_s13, %s18_s13 }
   0xb   :  { %p209_p3 = scmp.ne.s32.totalorder %s18_s13, %s208_s23  ;;  %p214_p5 = scmp.lt.s32.totalorder %s208_s23, %s208_s23 }
   0xd   :  { %p215_p6 = por %p214_p5, %p213_p4 }
   0xf   :  { %p216_p7 = pnand %p215_p6, %p209_p3 }
  0x11   :  { %219 = shalt.err (!%p216_p7)
}
  0x12   :  { %20 = dma.hbm_to_vmem [thread:$0]  %s344_s0, 128, %s18_s13, [#allocation3]  }
  0x13   :  { %s220_s28 = scalar_lea.hbm %s345_s1, 1024 }
  0x14   :  { %p221_p8 = scmp.ne.s32.totalorder %s345_s1, %s220_s28  ;;  %p224_p9 = scmp.lt.u32.totalorder %s220_s28, %s345_s1 }
  0x16   :  { %p226_p10 = pnand %p224_p9, %p221_p8 }
  0x18   :  { %229 = shalt.err (!%p226_p10)
}
  0x19   :  { %s230_s6 = scalar_lea.vmem %s298_s15, 1024  ;;  %p235_p12 = scmp.lt.s32.totalorder %s298_s15, %s298_s15 }
  0x1a   :  { %p231_p11 = scmp.ne.s32.totalorder %s298_s15, %s230_s6  ;;  %p236_p13 = scmp.lt.s32.totalorder %s230_s6, %s230_s6 }
  0x1c   :  { %p237_p0 = por %p236_p13, %p235_p12 }
  0x1e   :  { %p238_p1 = pnand %p237_p0, %p231_p11 }
  0x20   :  { %241 = shalt.err (!%p238_p1)
}
  0x21   :  { %s272_s0 = smov 128   ;;  %s273_s7 = smov 8  }
  0x22   :  { %32 = dma.hbm_to_vmem [thread:$0]  %s345_s1, 1024, %s298_s15, [#allocation6], %s272_s0, %s272_s0, %s273_s7  }
  0x23   :  { %264 = dma.done.wait [#allocation3], 128  }
  0x24   :  { %265 = vsyncadd [#allocation3], 4294967168 }
  0x25   :  { %266 = dma.done.wait [#allocation6], 1024  }
  0x26   :  { %267 = vsyncadd [#allocation6], 4294966272  ;;  %v274_v0 = vmov 0.0|0.0   ;;  %vm275_vm0 = vmmov 0   ;;  %v276_v1 = vmov 0.0   ;;  %v42_v2 = vld [vmem:[#allocation5] sm:$0xff] }
  0x27   :  { %178 = vmatprep.subr.bf16.mxu0 %v274_v0  ;;  %175 = vmatprep.mubr.msk.f32.mxu0 %vm275_vm0, %v276_v1  ;;  %v43_v3 = vld [vmem:[#allocation5 + $0x8] sm:$0xff]  ;;  %v44_v4 = vld [vmem:[#allocation5 + $0x10] sm:$0xff]  ;;  %v45_v6 = vld [vmem:[#allocation5 + $0x18] sm:$0xff]  ;;  %vm57_vm1 = vcmask 523264   ;;  %s277_s11 = smov [#allocation7]  }
  0x28   :  { %v179_v5 = vpack.c.bf16 %v43_v3, %v42_v2  ;;  %v182_v7 = vpack.c.bf16 %v45_v6, %v44_v4  ;;  %v46_v8 = vld [vmem:[#allocation5 + $0x20] sm:$0xff]  ;;  %v47_v9 = vld [vmem:[#allocation5 + $0x28] sm:$0xff]  ;;  %v48_v11 = vld [vmem:[#allocation5 + $0x30] sm:$0xff]  ;;  %s138_s12 = sshll.u32 %s277_s11, 4  ;;  %s139_s12 = int_to_ptr.vmem [resolvable:$true] %s138_s12 }
  0x29   :  { %v185_v10 = vpack.c.bf16 %v47_v9, %v46_v8  ;;  %v49_v12 = vld [vmem:[#allocation5 + $0x38] sm:$0xff]  ;;  %s242_s13 = scalar_lea.vmem %s139_s12, 128  ;;  %p247_p3 = scmp.lt.s32.totalorder %s139_s12, %s139_s12 }
  0x2a   :  { %180 = vmatpush3.bf16.msra.mxu0 %v179_v5  ;;  %v188_v13 = vpack.c.bf16 %v49_v12, %v48_v11  ;;  %v41_v14 = vld [vmem:[#allocation2] sm:$0xff]  ;;  %p243_p2 = scmp.ne.s32.totalorder %s139_s12, %s242_s13  ;;  %p248_p4 = scmp.lt.s32.totalorder %s242_s13, %s242_s13 }
  0x2b   :  { %181 = vmatprep.subr.bf16.mxu0 %v274_v0  ;;  %v148_v15 = vld [vmem:[%s346_s2] ss:$0 sm:$0xff] }
  0x2c   :  { %p249_p5 = por %p248_p4, %p247_p3 }
  0x2e   :  { %183 = vmatpush3.bf16.msra.mxu0 %v182_v7  ;;  %p250_p6 = pnand %p249_p5, %p243_p2 }
  0x2f   :  { %184 = vmatprep.subr.bf16.mxu0 %v274_v0 }
  0x32   :  { %186 = vmatpush3.bf16.msra.mxu0 %v185_v10 }
  0x33   :  { %187 = vmatprep.subr.bf16.mxu0 %v274_v0 }
  0x36   :  { %189 = vmatpush3.bf16.msra.mxu0 %v188_v13 }
  0x39   :  { %176 = vmatmul.mubr.msk.f32.vlgmr.msra.gmra.mrb[0].mxu0 %vm57_vm1, %v41_v14 }
 0x10c   :  { %v127_v16 = vpop.f32.mrb[0].mxu0 }
 0x10d   :  { %v128_v17 = vadd.f32 %v148_v15, %v127_v16  ;;  %v177_v18 = vpop.f32.mrb[1].mxu0 }
 0x10f   :  { %131 = vst [vmem:[#allocation7] sm:$0xff] %v128_v17 }
 0x110   :  { %253 = shalt.err (!%p250_p6)
}
 0x111   :  { %s254_s16 = scalar_lea.hbm %s347_s3, 128 }
 0x112   :  { %p255_p7 = scmp.ne.s32.totalorder %s347_s3, %s254_s16  ;;  %p258_p8 = scmp.lt.u32.totalorder %s254_s16, %s347_s3 }
 0x114   :  { %p260_p9 = pnand %p258_p8, %p255_p7 }
 0x116   :  { %263 = shalt.err (!%p260_p9)
}
 0x117   :  { %141 = dma.vmem_to_hbm [thread:$0]  %s139_s12, 128, %s347_s3, [#allocation4]  }
 0x118   :  { %268 = dma.done.wait [#allocation4], 128  }
 0x119   :  { %269 = vsyncadd [#allocation4], 4294967168 }
 0x11a   :  { %145 = vsyncpa [#allocation3], 1 }
 0x11b   :  { %146 = vsyncpa [#allocation6], 1 }
 0x11c   :  { %147 = vsyncpa [#allocation4], 1 }

</bundles_post_ra>
